<compile_context>
chip_gen: v7x
topology: tpu7x:2x2x1
jax: 0.10.0
libtpu: 0.0.40
codegen_flags: <defaults>
</compile_context>

<pallas_src>
import math

import jax
import jax.numpy as jnp
from jax import lax
from jax.experimental import pallas as pl
from jax.experimental.pallas import tpu as pltpu


# ----------------------------------------------------------------------------
# Kernel 1: Gram matrices (pre-solve)
# ----------------------------------------------------------------------------
def _gram_kernel(z_ref, g_ref, c_ref):
    """Per batch-tile: G = x^T x, C = x^T y with x = z[:, :-1], y = z[:, 1:]."""
    Bt, L, E = z_ref.shape
    z = z_ref[...].astype(jnp.float32)                        # (Bt, L, E)

    row = lax.broadcasted_iota(jnp.int32, (Bt, L, E), 1)
    xm = jnp.where(row < L - 1, z, 0.0)                       # x, last snapshot zeroed

    # y_sh[l] = z[(l+1) mod L] via a sublane rotate (XLU).  The wrapped row l = L-1
    # is killed inside the contraction by xm's zeroed last row, so no extra mask.
    y_sh = pltpu.roll(z, shift=L - 1, axis=1)

    dn_g = (((1,), (1,)), ((0,), (0,)))                       # contract snapshot axis
    g_ref[...] = lax.dot_general(xm, xm, dn_g, preferred_element_type=jnp.float32)
    c_ref[...] = lax.dot_general(xm, y_sh, dn_g, preferred_element_type=jnp.float32)


# ----------------------------------------------------------------------------
# Kernel 2: z_rec + z_pred (post-solve); K and K_step arrive precomputed.
# ----------------------------------------------------------------------------
def _make_post_kernel(L, E, pred_len):
    large = pred_len > L
    n_steps = math.ceil(pred_len / L) if large else 1
    dn = (((2,), (1,)), ((0,), (0,)))                         # batched matmul

    def kernel(z_ref, k_ref, ks_ref, zrec_ref, zpred_ref):
        Bt = z_ref.shape[0]
        z = z_ref[...].astype(jnp.float32)                    # (Bt, L, E)
        K = k_ref[...].astype(jnp.float32)                    # (Bt, E, E)
        Ks = ks_ref[...].astype(jnp.float32)                  # (Bt, E, E)

        # z_rec = cat(z[:, :1], z[:, :-1] @ K):
        #   w[l] = z[l] @ K, rolled down one snapshot (XLU), row 0 replaced by z[0].
        w = lax.dot_general(z, K, dn, preferred_element_type=jnp.float32)
        w_dn = pltpu.roll(w, shift=1, axis=1)                 # w_dn[l] = z[l-1] @ K
        row = lax.broadcasted_iota(jnp.int32, (Bt, L, E), 1)
        zrec_ref[...] = jnp.where(row == 0, z, w_dn).astype(zrec_ref.dtype)

        if not large:
            # z_pred = z[:, -P:, :] @ K_step; tail selection via sublane roll.
            P = pred_len
            zt = z if P == L else pltpu.roll(z, shift=P, axis=1)[:, :P, :]
            zpred_ref[...] = lax.dot_general(
                zt, Ks, dn, preferred_element_type=jnp.float32).astype(zpred_ref.dtype)
        else:
            # pred_len > input_len: stream every L-snapshot chunk straight to the
            # output at a static sublane-aligned offset (no concat temporaries).
            temp = z
            for s in range(n_steps):
                temp = lax.dot_general(temp, Ks, dn, preferred_element_type=jnp.float32)
                zpred_ref[:, s * L:(s + 1) * L, :] = temp.astype(zpred_ref.dtype)

    return kernel


# ----------------------------------------------------------------------------
# Wrapper: KPLayerApprox.forward equivalent
# ----------------------------------------------------------------------------
def _matrix_power(K, p):
    """Batched K^p via square-and-multiply (static p >= 1), in XLA."""
    result, base = None, K
    while p > 0:
        if p & 1:
            result = base if result is None else jnp.einsum("bij,bjk->bik", result, base)
        p >>= 1
        if p > 0:
            base = jnp.einsum("bij,bjk->bik", base, base)
    return result


def _pick_batch_tile(B, L, E, P_out, vmem_budget_bytes=8 << 20, max_tile=256):
    """Batch tile from a conservative VMEM budget (fits v7x's 64 MiB with headroom).

    max_tile also bounds the per-body batched-matmul unroll to keep compiles fast.
    """
    per_batch = 4 * (L * E            # z
                     + 2 * E * E      # K, K_step
                     + L * E          # z_rec
                     + P_out * E)     # z_pred
    per_batch *= 2                    # double-buffered pipelining
    bt = max(1, vmem_budget_bytes // per_batch)
    bt = int(min(bt, B, max_tile))
    # Keep >= 2 grid steps when B >= 2 so both v7x TensorCores get work
    # (cost is one extra ~0.35 us step on single-TC v5e/v6e).
    if B >= 2 and bt >= B:
        bt = (B + 1) // 2
    return bt


def kp_layer_approx(z, pred_len=1):
    """Pallas implementation of KPLayerApprox.forward; returns (z_rec, z_pred)."""
    B, L, E = z.shape
    assert L > 1, "snapshots number should be larger than 1"
    z = z.astype(jnp.float32)

    if pred_len <= L:
        power, P_out = pred_len, pred_len
    else:
        power = L
        P_out = math.ceil(pred_len / L) * L

    Bt = _pick_batch_tile(B, L, E, P_out)
    nb = -(-B // Bt)                  # cdiv: padded grid, no Bt=1 degeneration
    B_pad = nb * Bt
    z_p = jnp.pad(z, ((0, B_pad - B), (0, 0), (0, 0))) if B_pad > B else z

    par = pltpu.CompilerParams(dimension_semantics=("parallel",),
                               vmem_limit_bytes=32 << 20)

    # --- kernel 1: normal-equation Gram matrices ----------------------------
    G, C = pl.pallas_call(
        _gram_kernel,
        out_shape=(jax.ShapeDtypeStruct((B_pad, E, E), jnp.float32),
                   jax.ShapeDtypeStruct((B_pad, E, E), jnp.float32)),
        grid=(nb,),
        in_specs=[pl.BlockSpec((Bt, L, E), lambda b: (b, 0, 0))],
        out_specs=[pl.BlockSpec((Bt, E, E), lambda b: (b, 0, 0)),
                   pl.BlockSpec((Bt, E, E), lambda b: (b, 0, 0))],
        compiler_params=par,
    )(z_p)

    # --- tiny (E,E) solve, K powers, global NaN guards: XLA -----------------
    # Padded batches are sliced off first so a singular padded G can never flip
    # the global identity fallback for real batches.
    # TODO(synk): torch.linalg.lstsq is QR-based; normal equations + Cholesky is the
    # closest batched equivalent (differs for rank-deficient x, where lstsq returns a
    # minimum-norm solution instead of the NaN -> identity fallback).
    G_r, C_r = G[:B], C[:B]
    Lc = jnp.linalg.cholesky(G_r)                             # G = x^T x is symmetric PSD
    W = lax.linalg.triangular_solve(Lc, C_r, left_side=True, lower=True)
    K = lax.linalg.triangular_solve(Lc, W, left_side=True, lower=True, transpose_a=True)

    eye = jnp.eye(E, dtype=jnp.float32)[None]
    K = jnp.where(jnp.isnan(K).any(), eye, K)                 # global guard, as in torch
    K_step = _matrix_power(K, power)
    K_step = jnp.where(jnp.isnan(K_step).any(), eye, K_step)  # global guard, as in torch

    if B_pad > B:
        pad = ((0, B_pad - B), (0, 0), (0, 0))
        K_p, Ks_p = jnp.pad(K, pad), jnp.pad(K_step, pad)
    else:
        K_p, Ks_p = K, K_step

    # --- kernel 2: z_rec + z_pred -------------------------------------------
    post_kernel = _make_post_kernel(L, E, pred_len)
    z_rec, z_pred = pl.pallas_call(
        post_kernel,
        out_shape=(jax.ShapeDtypeStruct((B_pad, L, E), jnp.float32),
                   jax.ShapeDtypeStruct((B_pad, P_out, E), jnp.float32)),
        grid=(nb,),
        in_specs=[pl.BlockSpec((Bt, L, E), lambda b: (b, 0, 0)),
                  pl.BlockSpec((Bt, E, E), lambda b: (b, 0, 0)),
                  pl.BlockSpec((Bt, E, E), lambda b: (b, 0, 0))],
        out_specs=[pl.BlockSpec((Bt, L, E), lambda b: (b, 0, 0)),
                   pl.BlockSpec((Bt, P_out, E), lambda b: (b, 0, 0))],
        compiler_params=par,
    )(z_p, K_p, Ks_p)

    z_rec = z_rec[:B]
    z_pred = z_pred[:B, :pred_len, :]
    return z_rec, z_pred


# ----------------------------------------------------------------------------
# Reference (plain JAX, same normal-equations algorithm) for sanity checks.
# ----------------------------------------------------------------------------
def _reference(z, pred_len):
    B, L, E = z.shape
    x, y = z[:, :-1], z[:, 1:]
    G = jnp.einsum("ble,blf->bef", x, x)
    C = jnp.einsum("ble,blf->bef", x, y)
    K = jnp.linalg.solve(G, C)
    z_rec = jnp.concatenate([z[:, :1], jnp.einsum("ble,bef->blf", x, K)], axis=1)
    if pred_len <= L:
        Ks = _matrix_power(K, pred_len)
        z_pred = jnp.einsum("ble,bef->blf", z[:, -pred_len:, :], Ks)
    else:
        Ks = _matrix_power(K, L)
        temp, preds = z, []
        for _ in range(math.ceil(pred_len / L)):
            temp = jnp.einsum("ble,bef->blf", temp, Ks)
            preds.append(temp)
        z_pred = jnp.concatenate(preds, axis=1)[:, :pred_len, :]
    return z_rec, z_pred


if __name__ == "__main__":
    key = jax.random.PRNGKey(0)
    B, L, E = 2, 16, 8          # B batches, L snapshots, E embedding dim (L-1 >= E)
    z = jax.random.normal(key, (B, L, E), dtype=jnp.float32)

    # Short-horizon branch (pred_len <= input_len).
    pred_len = 4
    fwd = jax.jit(lambda zz: kp_layer_approx(zz, pred_len=pred_len))
    z_rec, z_pred = fwd(z)
    jax.block_until_ready((z_rec, z_pred))
    z_rec_ref, z_pred_ref = _reference(z, pred_len)
    assert z_rec.shape == (B, L, E) and z_pred.shape == (B, pred_len, E)
    assert jnp.allclose(z_rec, z_rec_ref, rtol=5e-2, atol=5e-2)
    assert jnp.allclose(z_pred, z_pred_ref, rtol=5e-2, atol=5e-2)

    # Long-horizon branch (pred_len > input_len).
    pred_len2 = 20
    fwd2 = jax.jit(lambda zz: kp_layer_approx(zz, pred_len=pred_len2))
    z_rec2, z_pred2 = fwd2(z)
    jax.block_until_ready((z_rec2, z_pred2))
    z_rec2_ref, z_pred2_ref = _reference(z, pred_len2)
    assert z_rec2.shape == (B, L, E) and z_pred2.shape == (B, pred_len2, E)
    assert jnp.allclose(z_rec2, z_rec2_ref, rtol=5e-2, atol=5e-2)
    assert jnp.allclose(z_pred2, z_pred2_ref, rtol=5e-2, atol=5e-2)

    print("KERNEL_OK")
</pallas_src>

<mosaic_0001>
module attributes {stable_mosaic.version = 11 : i64} {
  func.func @_gram_kernel(%arg0: i32, %arg1: memref<1x16x8xf32, #tpu.memory_space<vmem>>, %arg2: memref<1x8x8xf32, #tpu.memory_space<vmem>>, %arg3: memref<1x8x8xf32, #tpu.memory_space<vmem>>) attributes {dimension_semantics = [#tpu.dimension_semantics<parallel>], iteration_bounds = array<i64: 2>, scalar_prefetch = 0 : i64, scratch_operands = 0 : i64, tpu.core_type = #tpu.core_type<tc>, window_params = [{transform_indices = @transform_0, window_bounds = array<i64: 1, 16, 8>}, {transform_indices = @transform_1, window_bounds = array<i64: 1, 8, 8>}, {transform_indices = @transform_2, window_bounds = array<i64: 1, 8, 8>}]} {
    %c0 = arith.constant 0 : index
    %c0_0 = arith.constant 0 : index
    %c0_1 = arith.constant 0 : index
    %0 = vector.load %arg1[%c0, %c0_0, %c0_1] : memref<1x16x8xf32, #tpu.memory_space<vmem>>, vector<1x16x8xf32>
    %1 = tpu.iota {dimensions = array<i32: 1>} : vector<1x16x8xi32>
    %c15_i32 = arith.constant 15 : i32
    %2 = vector.broadcast %c15_i32 : i32 to vector<1x16x8xi32>
    %3 = arith.cmpi slt, %1, %2 : vector<1x16x8xi32>
    %cst = arith.constant 0.000000e+00 : f32
    %4 = vector.broadcast %cst : f32 to vector<1x16x8xf32>
    %5 = arith.select %3, %0, %4 : vector<1x16x8xi1>, vector<1x16x8xf32>
    %c15_i32_2 = arith.constant 15 : i32
    %6 = tpu.dynamic_rotate %0 by %c15_i32_2 dim 1 : vector<1x16x8xf32>, i32 -> vector<1x16x8xf32>
    %cst_3 = arith.constant dense<0.000000e+00> : vector<1x8x8xf32>
    %7 = tpu.matmul %5, %5, %cst_3 {dimension_numbers = #tpu.dot_dimension_numbers<[1], [1], [2], [2], [0, 0, 0, 2, 1, 2], [0], [0]>} : vector<1x16x8xf32>, vector<1x16x8xf32>, vector<1x8x8xf32> -> vector<1x8x8xf32>
    %c0_4 = arith.constant 0 : index
    %c0_5 = arith.constant 0 : index
    %c0_6 = arith.constant 0 : index
    %8 = vector.load %arg2[%c0_4, %c0_5, %c0_6] : memref<1x8x8xf32, #tpu.memory_space<vmem>>, vector<1x8x8xf32>
    tpu.vector_store %arg2[%c0_4, %c0_5, %c0_6], %7 {strides = array<i32>} : memref<1x8x8xf32, #tpu.memory_space<vmem>>, vector<1x8x8xf32>,
    %cst_7 = arith.constant dense<0.000000e+00> : vector<1x8x8xf32>
    %9 = tpu.matmul %5, %6, %cst_7 {dimension_numbers = #tpu.dot_dimension_numbers<[1], [1], [2], [2], [0, 0, 0, 2, 1, 2], [0], [0]>} : vector<1x16x8xf32>, vector<1x16x8xf32>, vector<1x8x8xf32> -> vector<1x8x8xf32>
    %c0_8 = arith.constant 0 : index
    %c0_9 = arith.constant 0 : index
    %c0_10 = arith.constant 0 : index
    %10 = vector.load %arg3[%c0_8, %c0_9, %c0_10] : memref<1x8x8xf32, #tpu.memory_space<vmem>>, vector<1x8x8xf32>
    tpu.vector_store %arg3[%c0_8, %c0_9, %c0_10], %9 {strides = array<i32>} : memref<1x8x8xf32, #tpu.memory_space<vmem>>, vector<1x8x8xf32>,
    return
  }
  func.func @transform_0(%arg0: i32) -> (i32, i32, i32) {
    %c0_i32 = arith.constant 0 : i32
    %c0_i32_0 = arith.constant 0 : i32
    %c0_i32_1 = arith.constant 0 : i32
    return %arg0, %c0_i32, %c0_i32_0 : i32, i32, i32
  }
  func.func @transform_1(%arg0: i32) -> (i32, i32, i32) {
    %c0_i32 = arith.constant 0 : i32
    %c0_i32_0 = arith.constant 0 : i32
    %c0_i32_1 = arith.constant 0 : i32
    return %arg0, %c0_i32, %c0_i32_0 : i32, i32, i32
  }
  func.func @transform_2(%arg0: i32) -> (i32, i32, i32) {
    %c0_i32 = arith.constant 0 : i32
    %c0_i32_0 = arith.constant 0 : i32
    %c0_i32_1 = arith.constant 0 : i32
    return %arg0, %c0_i32, %c0_i32_0 : i32, i32, i32
  }
}

module attributes {stable_mosaic.version = 11 : i64} {
  func.func @kernel(%arg0: i32, %arg1: memref<1x16x8xf32, #tpu.memory_space<vmem>>, %arg2: memref<1x8x8xf32, #tpu.memory_space<vmem>>, %arg3: memref<1x8x8xf32, #tpu.memory_space<vmem>>, %arg4: memref<1x16x8xf32, #tpu.memory_space<vmem>>, %arg5: memref<1x4x8xf32, #tpu.memory_space<vmem>>) attributes {dimension_semantics = [#tpu.dimension_semantics<parallel>], iteration_bounds = array<i64: 2>, scalar_prefetch = 0 : i64, scratch_operands = 0 : i64, tpu.core_type = #tpu.core_type<tc>, window_params = [{transform_indices = @transform_0, window_bounds = array<i64: 1, 16, 8>}, {transform_indices = @transform_1, window_bounds = array<i64: 1, 8, 8>}, {transform_indices = @transform_2, window_bounds = array<i64: 1, 8, 8>}, {transform_indices = @transform_3, window_bounds = array<i64: 1, 16, 8>}, {transform_indices = @transform_4, window_bounds = array<i64: 1, 4, 8>}]} {
    %c0 = arith.constant 0 : index
    %c0_0 = arith.constant 0 : index
    %c0_1 = arith.constant 0 : index
    %0 = vector.load %arg1[%c0, %c0_0, %c0_1] : memref<1x16x8xf32, #tpu.memory_space<vmem>>, vector<1x16x8xf32>
    %c0_2 = arith.constant 0 : index
    %c0_3 = arith.constant 0 : index
    %c0_4 = arith.constant 0 : index
    %1 = vector.load %arg2[%c0_2, %c0_3, %c0_4] : memref<1x8x8xf32, #tpu.memory_space<vmem>>, vector<1x8x8xf32>
    %c0_5 = arith.constant 0 : index
    %c0_6 = arith.constant 0 : index
    %c0_7 = arith.constant 0 : index
    %2 = vector.load %arg3[%c0_5, %c0_6, %c0_7] : memref<1x8x8xf32, #tpu.memory_space<vmem>>, vector<1x8x8xf32>
    %cst = arith.constant dense<0.000000e+00> : vector<1x16x8xf32>
    %3 = tpu.matmul %0, %1, %cst {dimension_numbers = #tpu.dot_dimension_numbers<[2], [1], [1], [2], [0, 0, 0, 1, 1, 2], [0], [0]>} : vector<1x16x8xf32>, vector<1x8x8xf32>, vector<1x16x8xf32> -> vector<1x16x8xf32>
    %c1_i32 = arith.constant 1 : i32
    %4 = tpu.dynamic_rotate %3 by %c1_i32 dim 1 : vector<1x16x8xf32>, i32 -> vector<1x16x8xf32>
    %5 = tpu.iota {dimensions = array<i32: 1>} : vector<1x16x8xi32>
    %c0_i32 = arith.constant 0 : i32
    %6 = vector.broadcast %c0_i32 : i32 to vector<1x16x8xi32>
    %7 = arith.cmpi eq, %5, %6 : vector<1x16x8xi32>
    %8 = arith.select %7, %0, %4 : vector<1x16x8xi1>, vector<1x16x8xf32>
    %c0_8 = arith.constant 0 : index
    %c0_9 = arith.constant 0 : index
    %c0_10 = arith.constant 0 : index
    %9 = vector.load %arg4[%c0_8, %c0_9, %c0_10] : memref<1x16x8xf32, #tpu.memory_space<vmem>>, vector<1x16x8xf32>
    tpu.vector_store %arg4[%c0_8, %c0_9, %c0_10], %8 {strides = array<i32>} : memref<1x16x8xf32, #tpu.memory_space<vmem>>, vector<1x16x8xf32>,
    %c4_i32 = arith.constant 4 : i32
    %10 = tpu.dynamic_rotate %0 by %c4_i32 dim 1 : vector<1x16x8xf32>, i32 -> vector<1x16x8xf32>
    %11 = vector.extract_strided_slice %10 {offsets = [0, 0, 0], sizes = [1, 4, 8], strides = [1, 1, 1]} : vector<1x16x8xf32> to vector<1x4x8xf32>
    %cst_11 = arith.constant dense<0.000000e+00> : vector<1x4x8xf32>
    %12 = tpu.matmul %11, %2, %cst_11 {dimension_numbers = #tpu.dot_dimension_numbers<[2], [1], [1], [2], [0, 0, 0, 1, 1, 2], [0], [0]>} : vector<1x4x8xf32>, vector<1x8x8xf32>, vector<1x4x8xf32> -> vector<1x4x8xf32>
    %c0_12 = arith.constant 0 : index
    %c0_13 = arith.constant 0 : index
    %c0_14 = arith.constant 0 : index
    %13 = vector.load %arg5[%c0_12, %c0_13, %c0_14] : memref<1x4x8xf32, #tpu.memory_space<vmem>>, vector<1x4x8xf32>
    tpu.vector_store %arg5[%c0_12, %c0_13, %c0_14], %12 {strides = array<i32>} : memref<1x4x8xf32, #tpu.memory_space<vmem>>, vector<1x4x8xf32>,
    return
  }
  func.func @transform_0(%arg0: i32) -> (i32, i32, i32) {
    %c0_i32 = arith.constant 0 : i32
    %c0_i32_0 = arith.constant 0 : i32
    %c0_i32_1 = arith.constant 0 : i32
    return %arg0, %c0_i32, %c0_i32_0 : i32, i32, i32
  }
  func.func @transform_1(%arg0: i32) -> (i32, i32, i32) {
    %c0_i32 = arith.constant 0 : i32
    %c0_i32_0 = arith.constant 0 : i32
    %c0_i32_1 = arith.constant 0 : i32
    return %arg0, %c0_i32, %c0_i32_0 : i32, i32, i32
  }
  func.func @transform_2(%arg0: i32) -> (i32, i32, i32) {
    %c0_i32 = arith.constant 0 : i32
    %c0_i32_0 = arith.constant 0 : i32
    %c0_i32_1 = arith.constant 0 : i32
    return %arg0, %c0_i32, %c0_i32_0 : i32, i32, i32
  }
  func.func @transform_3(%arg0: i32) -> (i32, i32, i32) {
    %c0_i32 = arith.constant 0 : i32
    %c0_i32_0 = arith.constant 0 : i32
    %c0_i32_1 = arith.constant 0 : i32
    return %arg0, %c0_i32, %c0_i32_0 : i32, i32, i32
  }
  func.func @transform_4(%arg0: i32) -> (i32, i32, i32) {
    %c0_i32 = arith.constant 0 : i32
    %c0_i32_0 = arith.constant 0 : i32
    %c0_i32_1 = arith.constant 0 : i32
    return %arg0, %c0_i32, %c0_i32_0 : i32, i32, i32
  }
}

</mosaic_0001>

<bundles_post_ra>
// kernel: custom-call.4
= control target key start
LH: loop header
LB: loop body
LE: loop exit
PB: predicated region body
PF: predicated region fallthrough
CT: control target
= control target key end

     0   :  { %s469_s6 = smov 0   ;;  %s471_s7 = smov 0   ;;  %s549_s0 = inlined_call_operand.vmem [shape: f32[2,8,8], index: 0, kind: input, shape index: {}]   ;;  %s550_s1 = inlined_call_operand.vmem [shape: f32[2,8,8], index: 1, kind: output, shape index: {}]  }
   0x1   :  { %s473_s8 = smov 0  }
   0x2 LB: > { %s367_s9 = sadd.s32 4294967295, %s456_s8   ;;  %s26_s10 = sadd.s32 1, %s452_s7  ;;  %s456_s8 = sphi %s473_s8, %s7_s8   ;;  %s452_s7 = sphi %s471_s7, %s552_s7   ;;  %s448_s6 = sphi %s469_s6, %s551_s6  }
   0x3   : > { %p28_p0 = scmp.ge.s32.totalorder %s26_s10, 2  ;;  %p369_p1 = scmp.ge.s32.totalorder %s456_s8, 2 }
   0x4   : > { %s42_s11 = sand.u32 (!%p369_p1), 1, %s456_s8   ;;  %s371_s12 = sshll.u32 (!%p369_p1), %s452_s7, 3 }
   0x5   : > { %s554_s10 = smov (%p28_p0, %s26_s10), 0  ;;  %40 = sbr.rel (%p369_p1) target bundleno = 12 (0xc), region = 16 }
   0x6   : > { %s370_s13 = sshll.u32 (!%p369_p1), %s42_s11, 3  ;;  %s48_s16 = scalar_lea.vmem (!%p369_p1), %s549_s0, %s371_s12 }
   0x7   : > { %v76_v0 = vld [vmem:[%s48_s16] sm:$0xff] (!%p369_p1)  ;;  %s44_s17 = scalar_lea.vmem (!%p369_p1), [#allocation0], %s370_s13 }
   0x8   : > { %77 = vst [vmem:[%s44_s17] sm:$0xff] (!%p369_p1), %v76_v0 }
   0xc PF: > { %p372_p2 = scmp.ge.s32.totalorder %s456_s8, 1  ;;  %p82_p3 = scmp.lt.s32.totalorder %s456_s8, 3 }
   0xe   : > { %p83_p4 = pnand %p372_p2, %p82_p3 }
   0xf   : > { %s89_s18 = sand.u32 (!%p83_p4), 1, %s367_s9   ;;  %v458_v1 = vmov (!%p83_p4), 0.0   ;;  %vm101_vm0 = vcmask (!%p83_p4), 7168   ;;  %vm119_vm1 = vcmask (!%p83_p4), 15368   ;;  %vm136_vm2 = vcmask (!%p83_p4), 1047553   ;;  %s390_s22 = sshll.u32 (!%p83_p4), %s448_s6, 3 }
  0x10   : > { %86 = sbr.rel (%p83_p4) target bundleno = 1377 (0x561), region = 54  ;;  %s373_s19 = sshll.u32 (!%p83_p4), %s89_s18, 3  ;;  %vm137_vm3 = vmand (!%p83_p4), %vm119_vm1, %vm136_vm2  ;;  %vm141_vm4 = vcmask (!%p83_p4), 23568   ;;  %vm158_vm5 = vcmask (!%p83_p4), 1047554   ;;  %vm163_vm7 = vcmask (!%p83_p4), 31768   ;;  %vm180_vm8 = vcmask (!%p83_p4), 1047555  }
  0x11   : > { %s496_s20 = scalar_lea.vmem (!%p83_p4), [#allocation1], %s373_s19  ;;  %s500_s21 = scalar_lea.vmem (!%p83_p4), [#allocation0], %s373_s19  ;;  %vm159_vm6 = vmand (!%p83_p4), %vm141_vm4, %vm158_vm5  ;;  %vm185_vm10 = vcmask (!%p83_p4), 39968   ;;  %vm202_vm11 = vcmask (!%p83_p4), 1047556   ;;  %vm207_vm13 = vcmask (!%p83_p4), 48168   ;;  %vm224_vm14 = vcmask (!%p83_p4), 1047557  }
  0x12   : > { %100 = vst [vmem:[%s496_s20] sm:$0xff] (!%p83_p4), %v458_v1  ;;  %v103_v5 = vld [vmem:[%s500_s21] ss:$0 sm:$0xff] (!%p83_p4)  ;;  %v376_v17 = vld [vmem:[%s500_s21 + $0x1] ss:$0 sm:$0xff] (!%p83_p4)  ;;  %v378_v29 = vld [vmem:[%s500_s21 + $0x2] ss:$0 sm:$0xff] (!%p83_p4)  ;;  %s280_s25 = scalar_lea.vmem (!%p83_p4), %s550_s1, %s390_s22 }
  0x13   : > { %v504_v9 = vld [vmem:[%s500_s21] sm:$0xff] (!%p83_p4)  ;;  %vm181_vm9 = vmand (!%p83_p4), %vm163_vm7, %vm180_vm8  ;;  %vm246_vm1 = vcmask (!%p83_p4), 1047558   ;;  %vm268_vm4 = vcmask (!%p83_p4), 1047559  }
  0x14   : > { %v380_v41 = vld [vmem:[%s500_s21 + $0x3] ss:$0 sm:$0xff] (!%p83_p4)  ;;  %v382_v53 = vld [vmem:[%s500_s21 + $0x4] ss:$0 sm:$0xff] (!%p83_p4)  ;;  %vm203_vm12 = vmand (!%p83_p4), %vm185_vm10, %vm202_vm11 }
  0x15   : > { %v384_v1 = vld [vmem:[%s500_s21 + $0x5] ss:$0 sm:$0xff] (!%p83_p4)  ;;  %vm225_vm15 = vmand (!%p83_p4), %vm207_vm13, %vm224_vm14 }
  0x19   : > { %v102_v2 = vld [vmem:[%s496_s20] ss:$0 sm:$0xff] }
  0x1a   : > { %v104_v3 = vmul.f32 %v102_v2, %v102_v2  ;;  %v111_v4 = vmul.f32 0.0, %v102_v2 }
  0x1c   : > { %105 = vadd.xlane.f32.xlu0 %v104_v3 }
  0x20   : > { %112 = vadd.xlane.f32.xlu0 %v111_v4 }
  0xa9   : > { %v106_v6 = vpop.xlane.xlu0 %105 }
  0xaa   : > { %v107_v7 = vsub.f32 %v103_v5, %v106_v6 }
  0xac   : > { %418 = vrsqrt.f32 %v107_v7 }
  0xad   : > { %v113_v8 = vpop.xlane.xlu0 %112 }
  0xae   : > { %v114_v10 = vsub.f32 %v504_v9, %v113_v8 }
  0xb6   : > { %v419_v11 = vpop.eup %418 }
  0xb7   : > { %v115_v12 = vmul.f32 %v419_v11, %v114_v10 }
  0xb9   : > { %v116_v13 = vsel %vm101_vm0, %v115_v12, 0.0  ;;  %vm229_vm0 = vcmask 56368  }
  0xba   : > { %118 = vst [vmem:[%s496_s20] sm:$0xff] %v116_v13  ;;  %vm247_vm2 = vmand %vm229_vm0, %vm246_vm1 }
  0xc1   : > { %v375_v14 = vld [vmem:[%s496_s20 + $0x1] ss:$0 sm:$0xff] }
  0xc2   : > { %v124_v15 = vmul.f32 %v375_v14, %v375_v14  ;;  %v131_v16 = vmul.f32 %v375_v14, %v116_v13  ;;  %v386_v14 = vld [vmem:[%s500_s21 + $0x6] ss:$0 sm:$0xff] }
  0xc4   : > { %125 = vadd.xlane.f32.xlu1 %v124_v15 }
  0xc8   : > { %132 = vadd.xlane.f32.xlu1 %v131_v16 }
 0x151   : > { %v126_v18 = vpop.xlane.xlu1 %125 }
 0x152   : > { %v127_v19 = vsub.f32 %v376_v17, %v126_v18 }
 0x154   : > { %420 = vrsqrt.f32 %v127_v19 }
 0x155   : > { %v133_v20 = vpop.xlane.xlu1 %132 }
 0x156   : > { %v134_v21 = vsub.f32 %v504_v9, %v133_v20 }
 0x15e   : > { %v421_v22 = vpop.eup %420 }
 0x15f   : > { %v135_v23 = vmul.f32 %v421_v22, %v134_v21 }
 0x161   : > { %v138_v24 = vsel %vm137_vm3, %v135_v23, 0.0  ;;  %vm251_vm3 = vcmask 64568  }
 0x162   : > { %v139_v25 = vadd.f32 %v138_v24, %v116_v13  ;;  %vm269_vm5 = vmand %vm251_vm3, %vm268_vm4 }
 0x164   : > { %140 = vst [vmem:[%s496_s20] sm:$0xff] %v139_v25 }
 0x16b   : > { %v377_v26 = vld [vmem:[%s496_s20 + $0x2] ss:$0 sm:$0xff] }
 0x16c   : > { %v153_v27 = vmul.f32 %v377_v26, %v139_v25  ;;  %v146_v28 = vmul.f32 %v377_v26, %v377_v26  ;;  %v388_v26 = vld [vmem:[%s500_s21 + $0x7] ss:$0 sm:$0xff] }
 0x16e   : > { %154 = vadd.xlane.f32.xlu1 %v153_v27  ;;  %147 = vadd.xlane.f32.xlu0 %v146_v28 }
 0x1fb   : > { %v148_v30 = vpop.xlane.xlu0 %147  ;;  %v155_v32 = vpop.xlane.xlu1 %154 }
 0x1fc   : > { %v149_v31 = vsub.f32 %v378_v29, %v148_v30  ;;  %v156_v33 = vsub.f32 %v504_v9, %v155_v32 }
 0x1fe   : > { %422 = vrsqrt.f32 %v149_v31 }
 0x208   : > { %v423_v34 = vpop.eup %422 }
 0x209   : > { %v157_v35 = vmul.f32 %v423_v34, %v156_v33 }
 0x20b   : > { %v160_v36 = vsel %vm159_vm6, %v157_v35, 0.0 }
 0x20c   : > { %v161_v37 = vadd.f32 %v160_v36, %v139_v25 }
 0x20e   : > { %162 = vst [vmem:[%s496_s20] sm:$0xff] %v161_v37 }
 0x215   : > { %v379_v38 = vld [vmem:[%s496_s20 + $0x3] ss:$0 sm:$0xff] }
 0x216   : > { %v175_v39 = vmul.f32 %v379_v38, %v161_v37  ;;  %v168_v40 = vmul.f32 %v379_v38, %v379_v38 }
 0x218   : > { %176 = vadd.xlane.f32.xlu1 %v175_v39  ;;  %169 = vadd.xlane.f32.xlu0 %v168_v40 }
 0x2a5   : > { %v170_v42 = vpop.xlane.xlu0 %169  ;;  %v177_v44 = vpop.xlane.xlu1 %176 }
 0x2a6   : > { %v171_v43 = vsub.f32 %v380_v41, %v170_v42  ;;  %v178_v45 = vsub.f32 %v504_v9, %v177_v44 }
 0x2a8   : > { %424 = vrsqrt.f32 %v171_v43 }
 0x2b2   : > { %v425_v46 = vpop.eup %424 }
 0x2b3   : > { %v179_v47 = vmul.f32 %v425_v46, %v178_v45 }
 0x2b5   : > { %v182_v48 = vsel %vm181_vm9, %v179_v47, 0.0 }
 0x2b6   : > { %v183_v49 = vadd.f32 %v182_v48, %v161_v37 }
 0x2b8   : > { %184 = vst [vmem:[%s496_s20] sm:$0xff] %v183_v49 }
 0x2bf   : > { %v381_v50 = vld [vmem:[%s496_s20 + $0x4] ss:$0 sm:$0xff] }
 0x2c0   : > { %v197_v51 = vmul.f32 %v381_v50, %v183_v49  ;;  %v190_v52 = vmul.f32 %v381_v50, %v381_v50 }
 0x2c2   : > { %198 = vadd.xlane.f32.xlu1 %v197_v51  ;;  %191 = vadd.xlane.f32.xlu0 %v190_v52 }
 0x34f   : > { %v192_v54 = vpop.xlane.xlu0 %191  ;;  %v199_v56 = vpop.xlane.xlu1 %198 }
 0x350   : > { %v193_v55 = vsub.f32 %v382_v53, %v192_v54  ;;  %v200_v57 = vsub.f32 %v504_v9, %v199_v56 }
 0x352   : > { %426 = vrsqrt.f32 %v193_v55 }
 0x35c   : > { %v427_v58 = vpop.eup %426 }
 0x35d   : > { %v201_v59 = vmul.f32 %v427_v58, %v200_v57 }
 0x35f   : > { %v204_v60 = vsel %vm203_vm12, %v201_v59, 0.0 }
 0x360   : > { %v205_v61 = vadd.f32 %v204_v60, %v183_v49 }
 0x362   : > { %206 = vst [vmem:[%s496_s20] sm:$0xff] %v205_v61 }
 0x369   : > { %v383_v62 = vld [vmem:[%s496_s20 + $0x5] ss:$0 sm:$0xff] }
 0x36a   : > { %v219_v63 = vmul.f32 %v383_v62, %v205_v61  ;;  %v212_v0 = vmul.f32 %v383_v62, %v383_v62 }
 0x36c   : > { %220 = vadd.xlane.f32.xlu1 %v219_v63  ;;  %213 = vadd.xlane.f32.xlu0 %v212_v0 }
 0x3f9   : > { %v214_v2 = vpop.xlane.xlu0 %213  ;;  %v221_v4 = vpop.xlane.xlu1 %220 }
 0x3fa   : > { %v215_v3 = vsub.f32 %v384_v1, %v214_v2  ;;  %v222_v5 = vsub.f32 %v504_v9, %v221_v4 }
 0x3fc   : > { %428 = vrsqrt.f32 %v215_v3 }
 0x406   : > { %v429_v6 = vpop.eup %428 }
 0x407   : > { %v223_v7 = vmul.f32 %v429_v6, %v222_v5 }
 0x409   : > { %v226_v8 = vsel %vm225_vm15, %v223_v7, 0.0 }
 0x40a   : > { %v227_v10 = vadd.f32 %v226_v8, %v205_v61 }
 0x40c   : > { %228 = vst [vmem:[%s496_s20] sm:$0xff] %v227_v10 }
 0x413   : > { %v385_v11 = vld [vmem:[%s496_s20 + $0x6] ss:$0 sm:$0xff] }
 0x414   : > { %v241_v12 = vmul.f32 %v385_v11, %v227_v10  ;;  %v234_v13 = vmul.f32 %v385_v11, %v385_v11 }
 0x416   : > { %242 = vadd.xlane.f32.xlu1 %v241_v12  ;;  %235 = vadd.xlane.f32.xlu0 %v234_v13 }
 0x4a3   : > { %v236_v15 = vpop.xlane.xlu0 %235  ;;  %v243_v17 = vpop.xlane.xlu1 %242 }
 0x4a4   : > { %v237_v16 = vsub.f32 %v386_v14, %v236_v15  ;;  %v244_v18 = vsub.f32 %v504_v9, %v243_v17 }
 0x4a6   : > { %430 = vrsqrt.f32 %v237_v16 }
 0x4b0   : > { %v431_v19 = vpop.eup %430 }
 0x4b1   : > { %v245_v20 = vmul.f32 %v431_v19, %v244_v18 }
 0x4b3   : > { %v248_v21 = vsel %vm247_vm2, %v245_v20, 0.0 }
 0x4b4   : > { %v249_v22 = vadd.f32 %v248_v21, %v227_v10 }
 0x4b6   : > { %250 = vst [vmem:[%s496_s20] sm:$0xff] %v249_v22 }
 0x4bd   : > { %v387_v23 = vld [vmem:[%s496_s20 + $0x7] ss:$0 sm:$0xff] }
 0x4be   : > { %v263_v24 = vmul.f32 %v387_v23, %v249_v22  ;;  %v256_v25 = vmul.f32 %v387_v23, %v387_v23 }
 0x4c0   : > { %264 = vadd.xlane.f32.xlu1 %v263_v24  ;;  %257 = vadd.xlane.f32.xlu0 %v256_v25 }
 0x54d   : > { %v258_v27 = vpop.xlane.xlu0 %257  ;;  %v265_v29 = vpop.xlane.xlu1 %264 }
 0x54e   : > { %v259_v28 = vsub.f32 %v388_v26, %v258_v27  ;;  %v266_v30 = vsub.f32 %v504_v9, %v265_v29 }
 0x550   : > { %432 = vrsqrt.f32 %v259_v28 }
 0x55a   : > { %v433_v31 = vpop.eup %432 }
 0x55b   : > { %v267_v32 = vmul.f32 %v433_v31, %v266_v30 }
 0x55d   : > { %v270_v33 = vsel %vm269_vm5, %v267_v32, 0.0 }
 0x55e   : > { %v271_v34 = vadd.f32 %v270_v33, %v249_v22 }
 0x560   : > { %272 = vst [vmem:[%s496_s20] sm:$0xff] %v271_v34  ;;  %309 = vst [vmem:[%s280_s25] sm:$0xff] %v271_v34 }
 0x561 PF: > { %s7_s8 = sadd.s32 1, %s456_s8   ;;  %s551_s6 = smov %s452_s7 }
 0x562   : > { %p4_p5 = scmp.ge.s32.totalorder %s7_s8, 4   ;;  %s552_s7 = smov %s554_s10 }
 0x564   :  { %6 = sbr.rel (!%p4_p5) target bundleno = 2 (0x2), region = 132 }

// kernel: custom-call.6
= control target key start
LH: loop header
LB: loop body
LE: loop exit
PB: predicated region body
PF: predicated region fallthrough
CT: control target
= control target key end

     0   :  { %s385_s6 = smov 0   ;;  %s387_s7 = smov 0   ;;  %s443_s0 = inlined_call_operand.vmem [shape: f32[2,1,8,8], index: 0, kind: input, shape index: {}]   ;;  %s444_s1 = inlined_call_operand.vmem [shape: f32[2,1,8,8], index: 1, kind: output, shape index: {}]  }
   0x1   :  { %s389_s8 = smov 0  }
   0x2 LB: > { %s311_s9 = sadd.s32 4294967295, %s372_s8   ;;  %s33_s10 = sadd.s32 1, %s368_s7  ;;  %s372_s8 = sphi %s389_s8, %s7_s8   ;;  %s368_s7 = sphi %s387_s7, %s446_s7   ;;  %s364_s6 = sphi %s385_s6, %s445_s6  }
   0x3   : > { %p35_p0 = scmp.ge.s32.totalorder %s33_s10, 2  ;;  %p313_p1 = scmp.ge.s32.totalorder %s372_s8, 2 }
   0x4   : > { %s49_s11 = sand.u32 (!%p313_p1), 1, %s372_s8   ;;  %s315_s12 = sshll.u32 (!%p313_p1), %s368_s7, 3 }
   0x5   : > { %s448_s10 = smov (%p35_p0, %s33_s10), 0  ;;  %47 = sbr.rel (%p313_p1) target bundleno = 12 (0xc), region = 16 }
   0x6   : > { %s314_s13 = sshll.u32 (!%p313_p1), %s49_s11, 3  ;;  %s56_s16 = scalar_lea.vmem (!%p313_p1), %s443_s0, %s315_s12 }
   0x7   : > { %v84_v0 = vld [vmem:[%s56_s16] sm:$0xff] (!%p313_p1)  ;;  %s51_s17 = scalar_lea.vmem (!%p313_p1), [#allocation0], %s314_s13 }
   0x8   : > { %85 = vst [vmem:[%s51_s17] sm:$0xff] (!%p313_p1), %v84_v0 }
   0xc PF: > { %p316_p2 = scmp.ge.s32.totalorder %s372_s8, 1  ;;  %p90_p3 = scmp.lt.s32.totalorder %s372_s8, 3 }
   0xe   : > { %p91_p4 = pnand %p316_p2, %p90_p3 }
  0x10   : > { %94 = sbr.rel (%p91_p4) target bundleno = 1213 (0x4bd), region = 54 }
  0x17   : > { %s97_s18 = sand.u32 1, %s311_s9   ;;  %v108_v1 = vlaneseq  ;;  %v374_v10 = vmov -1.0   ;;  %s320_s21 = sshll.u32 %s364_s6, 3 }
  0x18   : > { %s317_s19 = sshll.u32 %s97_s18, 3  ;;  %s219_s24 = scalar_lea.vmem %s444_s1, %s320_s21 }
  0x19   : > { %v412_v2 = vand.u32 127, %v108_v1  ;;  %v112_v3 = vshrl.u32 %v108_v1, 7  ;;  %s99_s20 = scalar_lea.vmem [#allocation0], %s317_s19 }
  0x1a   : > { %v115_v4 = vld [vmem:[%s99_s20] sm:$0xff] }
  0x1b   : > { %vm110_vm0 = vcmp.lt.s32.totalorder %v412_v2, 8  ;;  %vm114_vm1 = vcmp.eq.s32.totalorder %v112_v3, %v412_v2  ;;  %vm119_vm2 = vcmp.ge.s32.totalorder %v112_v3, %v412_v2  ;;  %vm133_vm4 = vcmp.eq.s32.totalorder %v412_v2, 0 }
  0x1c   : > { %v116_v5 = vsel %vm114_vm1, %v115_v4, 0.0  ;;  %vm120_vm3 = vmand %vm119_vm2, %vm110_vm0  ;;  %vm130_vm5 = vcmp.eq.s32.totalorder %v412_v2, %v112_v3  ;;  %v134_v11 = vsel %vm133_vm4, 1.0, %v374_v10  ;;  %vm141_vm6 = vcmp.eq.s32.totalorder %v412_v2, 1 }
  0x1d   : > { %v121_v6 = vsel %vm120_vm3, %v115_v4, 0.0  ;;  %117 = vadd.xlane.f32.xlu0 %v116_v5  ;;  %v135_v12 = vsel %vm130_vm5, %v134_v11, 0.0  ;;  %vm151_vm7 = vcmp.eq.s32.totalorder %v412_v2, 2  ;;  %vm161_vm8 = vcmp.eq.s32.totalorder %v412_v2, 3 }
  0x1e   : > { %vm171_vm9 = vcmp.eq.s32.totalorder %v412_v2, 4  ;;  %vm181_vm10 = vcmp.eq.s32.totalorder %v412_v2, 5  ;;  %vm191_vm11 = vcmp.eq.s32.totalorder %v412_v2, 6  ;;  %vm201_vm12 = vcmp.eq.s32.totalorder %v412_v2, 7 }
  0xaa   : > { %v417_v7 = vpop.xlane.xlu0 %117 }
  0xab   : > { %348 = vrcp.f32 %v417_v7  ;;  %vm208_vm13 = vweird.f32 %v417_v7 }
  0xb5   : > { %v349_v8 = vpop.eup %348 }
  0xb6   : > { %v123_v9 = vmul.f32 %v349_v8, %v121_v6 }
  0xb8   : > { %124 = vst [vmem:[#allocation2] sm:$0xff] %v123_v9 }
  0xbf   : > { %v137_v13 = vld [vmem:[#allocation2 + $0x1] ss:$0 sm:$0xff]  ;;  %v147_v16 = vld [vmem:[#allocation2 + $0x2] ss:$0 sm:$0xff]  ;;  %v157_v21 = vld [vmem:[#allocation2 + $0x3] ss:$0 sm:$0xff] }
  0xc0   : > { %v138_v14 = vxor.u32 2147483648, %v137_v13  ;;  %v148_v18 = vxor.u32 2147483648, %v147_v16  ;;  %v158_v23 = vxor.u32 2147483648, %v157_v21  ;;  %v167_v26 = vld [vmem:[#allocation2 + $0x4] ss:$0 sm:$0xff] }
  0xc1   : > { %v168_v28 = vxor.u32 2147483648, %v167_v26  ;;  %v177_v31 = vld [vmem:[#allocation2 + $0x5] ss:$0 sm:$0xff]  ;;  %v187_v36 = vld [vmem:[#allocation2 + $0x6] ss:$0 sm:$0xff] }
  0xc2   : > { %v142_v15 = vmul.f32 %v138_v14, %v135_v12  ;;  %v178_v33 = vxor.u32 2147483648, %v177_v31  ;;  %v188_v38 = vxor.u32 2147483648, %v187_v36  ;;  %v197_v41 = vld [vmem:[#allocation2 + $0x7] ss:$0 sm:$0xff] }
  0xc3   : > { %v198_v43 = vxor.u32 2147483648, %v197_v41 }
  0xc4   : > { %143 = vadd.xlane.f32.xlu0 %v142_v15 }
 0x151   : > { %v144_v17 = vpop.xlane.xlu0 %143 }
 0x152   : > { %v145_v19 = vsel %vm141_vm6, %v144_v17, %v135_v12 }
 0x153   : > { %v152_v20 = vmul.f32 %v148_v18, %v145_v19 }
 0x155   : > { %153 = vadd.xlane.f32.xlu1 %v152_v20 }
 0x1e2   : > { %v154_v22 = vpop.xlane.xlu1 %153 }
 0x1e3   : > { %v155_v24 = vsel %vm151_vm7, %v154_v22, %v145_v19 }
 0x1e4   : > { %v162_v25 = vmul.f32 %v158_v23, %v155_v24 }
 0x1e6   : > { %163 = vadd.xlane.f32.xlu1 %v162_v25 }
 0x273   : > { %v164_v27 = vpop.xlane.xlu1 %163 }
 0x274   : > { %v165_v29 = vsel %vm161_vm8, %v164_v27, %v155_v24 }
 0x275   : > { %v172_v30 = vmul.f32 %v168_v28, %v165_v29 }
 0x277   : > { %173 = vadd.xlane.f32.xlu0 %v172_v30 }
 0x304   : > { %v174_v32 = vpop.xlane.xlu0 %173 }
 0x305   : > { %v175_v34 = vsel %vm171_vm9, %v174_v32, %v165_v29 }
 0x306   : > { %v182_v35 = vmul.f32 %v178_v33, %v175_v34 }
 0x308   : > { %183 = vadd.xlane.f32.xlu1 %v182_v35 }
 0x395   : > { %v184_v37 = vpop.xlane.xlu1 %183 }
 0x396   : > { %v185_v39 = vsel %vm181_vm10, %v184_v37, %v175_v34 }
 0x397   : > { %v192_v40 = vmul.f32 %v188_v38, %v185_v39 }
 0x399   : > { %193 = vadd.xlane.f32.xlu0 %v192_v40 }
 0x426   : > { %v194_v42 = vpop.xlane.xlu0 %193 }
 0x427   : > { %v195_v44 = vsel %vm191_vm11, %v194_v42, %v185_v39 }
 0x428   : > { %v202_v45 = vmul.f32 %v198_v43, %v195_v44 }
 0x42a   : > { %203 = vadd.xlane.f32.xlu1 %v202_v45 }
 0x4b7   : > { %v204_v46 = vpop.xlane.xlu1 %203 }
 0x4b8   : > { %v205_v47 = vsel %vm201_vm12, %v204_v46, %v195_v44 }
 0x4b9   : > { %v207_v48 = vmul.f32 %v349_v8, %v205_v47 }
 0x4bb   : > { %v209_v49 = vsel %vm208_vm13, %v205_v47, %v207_v48 }
 0x4bc   : > { %248 = vst [vmem:[%s219_s24] sm:$0xff] %v209_v49 }
 0x4bd PF: > { %s7_s8 = sadd.s32 1, %s372_s8   ;;  %s445_s6 = smov %s368_s7 }
 0x4be   : > { %p4_p5 = scmp.ge.s32.totalorder %s7_s8, 4   ;;  %s446_s7 = smov %s448_s10 }
 0x4c0   :  { %6 = sbr.rel (!%p4_p5) target bundleno = 2 (0x2), region = 125 }

// kernel: _lambda_.3
= control target key start
LH: loop header
LB: loop body
LE: loop exit
PB: predicated region body
PF: predicated region fallthrough
CT: control target
= control target key end

     0   :  { %10 = vsyncpa [#allocation3], 0  ;;  %s857_s0 = inlined_call_operand.vmem [shape: f32[2,16,8], index: 0, kind: input, shape index: {}]   ;;  %s858_s1 = inlined_call_operand.vmem [shape: f32[2,8,8], index: 1, kind: input, shape index: {}]   ;;  %s859_s2 = inlined_call_operand.vmem [shape: f32[2,8,8], index: 2, kind: input, shape index: {}]   ;;  %s860_s3 = inlined_call_operand.vmem [shape: f32[2,16,8], index: 3, kind: output, shape index: {0}]   ;;  %s861_s4 = inlined_call_operand.hbm [shape: f32[2,4,8], index: 4, kind: output, shape index: {1}]  }
   0x1   :  { %12 = vsyncpa [#allocation3 + $0x1], 0  ;;  %s720_s15 = smov 0   ;;  %s722_s16 = smov 0  }
   0x2   :  { %s724_s17 = smov 0   ;;  %s726_s18 = smov 0  }
   0x3 LB: > { %s741_s19 = sadd.s32 4294967295, %s690_s18   ;;  %s552_s20 = sadd.s32 4294967294, %s690_s18   ;;  %s690_s18 = sphi %s726_s18, %s867_s18   ;;  %s686_s17 = sphi %s724_s17, %s866_s17   ;;  %s682_s16 = sphi %s722_s16, %s865_s16   ;;  %s678_s15 = sphi %s720_s15, %s864_s15  }
   0x4   : > { %s745_s21 = sadd.s32 1, %s690_s18   ;;  %s129_s22 = sadd.s32 1, %s686_s17 }
   0x5   : > { %s126_s23 = ssub.s32 %s690_s18, %s745_s21  ;;  %p139_p0 = scmp.ne.s32.totalorder %s686_s17, %s682_s16 }
   0x6   : > { %p127_p1 = scmp.eq.s32.totalorder %s126_s23, 0  ;;  %p140_p2 = scmp.eq.s32.totalorder %s741_s19, 1 }
   0x7   : > { %p145_p3 = scmp.ne.s32.totalorder %s682_s16, %s678_s15  ;;  %p146_p4 = scmp.eq.s32.totalorder %s552_s20, 1 }
   0x8   : > { %s756_s24 = scalar_select %p127_p1, %s686_s17, %s129_s22  }
   0x9   : > { %p758_p5 = por %p140_p2, %p139_p0  ;;  %p762_p6 = por %p146_p4, %p145_p3 }
   0xa   : > { %p555_p7 = scmp.ge.s32.totalorder %s690_s18, 1  ;;  %p186_p8 = scmp.lt.s32.totalorder %s690_s18, 3 }
   0xc   : > { %p187_p9 = pnand %p555_p7, %p186_p8 }
   0xd   : > { %p225_p10 = scmp.lt.s32.totalorder (!%p187_p9), %s741_s19, 1  ;;  %v331_v0 = vlaneseq (!%p187_p9)  ;;  %v692_v1 = vmov (!%p187_p9), 0.0   ;;  %vm693_vm0 = vmmov (!%p187_p9), 0   ;;  %vm247_vm1 = vcmask (!%p187_p9), 64512   ;;  %s222_s13 = sand.u32 (!%p187_p9), 1, %s682_s16  }
   0xe   : > { %190 = sbr.rel (%p187_p9) target bundleno = 258 (0x102), region = 32  ;;  %582 = vmatprep.subr.mxu1 (!%p187_p9), %v692_v1  ;;  %584 = vmatprep.mubr.msk.f32.mxu1 (!%p187_p9), %vm693_vm0, %v692_v1  ;;  %s556_s14 = sshll.u32 (!%p187_p9), %s222_s13, 2  ;;  %vm420_vm3 = vcmask (!%p187_p9), 60416  }
   0xf   : > { %v772_v2 = vshrl.u32 (!%p187_p9), %v331_v0, 7  ;;  %s567_s20 = sshll.u32 (!%p187_p9), %s741_s19, 6  ;;  %s224_s22 = scalar_lea.vmem (!%p187_p9), [#allocation2], %s556_s14 }
  0x10   : > { %s444_s23 = sshll.u32 (!%p187_p9), %s224_s22, 4  ;;  %s796_s5 = scalar_lea.hbm (!%p187_p9), %s861_s4, %s567_s20  ;;  %s798_s23 = int_to_ptr.vmem [resolvable:$true] %s444_s23 }
  0x11   : > { %vm345_vm2 = vcmp.lt.s32.totalorder (!%p187_p9), %v772_v2, 4  ;;  %vm333_vm4 = vcmp.lt.s32.totalorder (!%p187_p9), %v772_v2, 1  ;;  %vm337_vm5 = vcmp.eq.s32.totalorder (!%p187_p9), %v772_v2, 0  ;;  %s428_s8 = scalar_lea.sflag (!%p187_p9), [#allocation3], %s222_s13  ;;  %s694_s10 = smov (!%p187_p9), [#allocation2]  }
  0x12   : > { %s632_s11 = sshll.u32 (!%p187_p9), %s694_s10, 4  ;;  %s633_s11 = int_to_ptr.vmem [resolvable:$false] %s632_s11 }
  0x13   : > { %p635_p0 = scmp.lt.s32.totalorder (!%p187_p9), %s798_s23, %s633_s11 }
  0x15   : > { %s770_s27 = scalar_select %p225_p10, %s741_s19, 1 }
  0x17   : > { %s559_s28 = sshll.u32 %s770_s27, 3  ;;  %s570_s29 = sshll.u32 %s770_s27, 4 }
  0x18   : > { %s233_s6 = scalar_lea.vmem %s858_s1, %s559_s28  ;;  %s229_s9 = scalar_lea.vmem %s857_s0, %s570_s29 }
  0x19   : > { %v245_v3 = vld [vmem:[%s233_s6] sm:$0xff]  ;;  %v244_v5 = vld [vmem:[%s229_s9 + $0x8] sm:$0xff]  ;;  %s237_s12 = scalar_lea.vmem %s859_s2, %s559_s28  ;;  %s806_s7 = scalar_lea.vmem %s860_s3, %s570_s29 }
  0x1a   : > { %v243_v4 = vld [vmem:[%s229_s9] sm:$0xff]  ;;  %577 = vmatprep.subr.mxu0 %v245_v3  ;;  %v344_v7 = vrot.slane %v244_v5, 4  ;;  %s628_s9 = scalar_lea.vmem %s798_s23, 64  ;;  %s634_s27 = scalar_lea.vmem %s633_s11, 128 }
  0x1b   : > { %579 = vmatprep.mubr.msk.f32.mxu0 %vm247_vm1, %v243_v4  ;;  %v343_v6 = vrot.slane %v243_v4, 4  ;;  %v246_v8 = vld [vmem:[%s237_s12] sm:$0xff]  ;;  %578 = vmatpush3.msra.mxu0 %v245_v3  ;;  %p629_p11 = scmp.ne.s32.totalorder %s798_s23, %s628_s9  ;;  %p636_p1 = scmp.lt.s32.totalorder %s634_s27, %s628_s9 }
  0x1c   : > { %583 = vmatpush3.msra.mxu1 %v246_v8  ;;  %580 = vmatmul.mubr.msk.f32.vlgmr.msra.gmra.mrb[0].mxu0 %vm247_vm1, %v244_v5 }
  0x1d   : > { %v346_v9 = vsel %vm345_vm2, %v344_v7, %v343_v6  ;;  %p630_p12 = pnand %p629_p11, %p758_p5  ;;  %p637_p2 = por %p636_p1, %p635_p0 }
  0x1e   : > { %585 = vmatmul.mubr.msk.f32.vlgmr.msra.gmra.mrb[0].mxu1 %vm247_vm1, %v346_v9 }
  0x1f   : > { %p631_p13 = pneg %p630_p12 }
  0x21   : > { %p638_p3 = pnand %p637_p2, %p631_p13 }
  0xef   : > { %v581_v10 = vpop.f32.mrb[0].mxu0 }
  0xf0   : > { %v330_v11 = vrot.slane %v581_v10, 7  ;;  %v320_v12 = vpop.f32.mrb[1].mxu0 }
  0xf1   : > { %v416_v13 = vpop.f32.mrb[0].mxu1  ;;  %v329_v14 = vrot.slane %v320_v12, 7 }
  0xf2   : > { %421 = vst.msk [vmem:[%s224_s22] sm:$0xf] %vm420_vm3, %v416_v13  ;;  %v586_v15 = vpop.f32.mrb[1].mxu1 }
  0xf3   : > { %641 = shalt.err (!%p638_p3)
}
  0xf4   : > { %s642_s29 = scalar_lea.hbm %s796_s5, 64  ;;  %s646_s14 = scalar_lea.hbm %s861_s4, 128 }
  0xf5   : > { %p643_p4 = scmp.ne.s32.totalorder %s796_s5, %s642_s29  ;;  %p647_p9 = scmp.lt.u32.totalorder %s796_s5, %s861_s4 }
  0xf6   : > { %p648_p10 = scmp.lt.u32.totalorder %s646_s14, %s642_s29  ;;  %p650_p12 = scmp.lt.u32.totalorder %s642_s29, %s796_s5 }
  0xf7   : > { %p644_p7 = pnand %p643_p4, %p758_p5 }
  0xf8   : > { %p649_p11 = por %p648_p10, %p647_p9 }
  0xf9   : > { %p645_p8 = pneg %p644_p7 }
  0xfa   : > { %p651_p13 = por %p650_p12, %p649_p11 }
  0xfc   : > { %p652_p0 = pnand %p651_p13, %p645_p8 }
  0xfe   : > { %655 = shalt.err (!%p652_p0)
}
  0xff   : > { %587 = dma.vmem_to_hbm [thread:$0]  (%p758_p5), %s798_s23, 64, %s796_s5, %s428_s8   ;;  %v334_v16 = vsel %vm333_vm4, %v329_v14, %v330_v11  ;;  %v335_v17 = vsel %vm333_vm4, %v330_v11, %v329_v14 }
 0x100   : > { %v339_v18 = vsel %vm337_vm5, %v243_v4, %v335_v17  ;;  %342 = vst.msk [vmem:[%s806_s7 + $0x8] sm:$0xff] %vm247_vm1, %v334_v16 }
 0x101   : > { %341 = vst.msk [vmem:[%s806_s7] sm:$0xff] %vm247_vm1, %v339_v18 }
 0x102 PF: > { %p593_p1 = scmp.ge.s32.totalorder %s690_s18, 2  ;;  %s464_s25 = sand.u32 1, %s678_s15  }
 0x103   : > { %s465_s23 = scalar_lea.sflag [#allocation3], %s464_s25 }
 0x104   : > { %p590_p5 = pnand %p593_p1, %p762_p6 }
 0x106   : > { %673 = dma.done.wait (!%p590_p5), %s465_s23, 64  }
 0x107   : > { %675 = vsyncadd (!%p590_p5), %s465_s23, 4294967232  ;;  %p15_p2 = scmp.ge.s32.totalorder %s745_s21, 4   ;;  %s864_s15 = smov %s682_s16 }
 0x108   : > { %s865_s16 = smov %s686_s17  ;;  %s866_s17 = smov %s756_s24 }
 0x109   : > { %s867_s18 = smov %s745_s21  ;;  %17 = sbr.rel (!%p15_p2) target bundleno = 3 (0x3), region = 85 }
 0x110   :  { %470 = vsyncpa [#allocation3], 1 }
 0x111   :  { %472 = vsyncpa [#allocation3 + $0x1], 1 }

// kernel: _lambda_.2
= control target key start
LH: loop header
LB: loop body
LE: loop exit
PB: predicated region body
PF: predicated region fallthrough
CT: control target
= control target key end

     0   :  { %s511_s9 = smov 0   ;;  %s535_s0 = inlined_call_operand.vmem [shape: f32[2,16,8], index: 0, kind: input, shape index: {}]   ;;  %s536_s1 = inlined_call_operand.vmem [shape: f32[2,8,8], index: 1, kind: output, shape index: {0}]   ;;  %s537_s2 = inlined_call_operand.vmem [shape: f32[2,8,8], index: 2, kind: output, shape index: {1}]  }
   0x1 LB: > { %s430_s10 = sadd.s32 4294967295, %s490_s9   ;;  %p434_p0 = scmp.ge.s32.totalorder %s490_s9, 1  ;;  %s490_s9 = sphi %s511_s9, %s13_s9  }
   0x2   : > { %p115_p1 = scmp.lt.s32.totalorder %s490_s9, 3 }
   0x4   : > { %p116_p2 = pnand %p434_p0, %p115_p1 }
   0x5   : > { %p140_p3 = scmp.lt.s32.totalorder (!%p116_p2), %s430_s10, 1  ;;  %v155_v0 = vlaneseq (!%p116_p2)  ;;  %v492_v1 = vmov (!%p116_p2), 0.0|0.0   ;;  %vm493_vm0 = vmmov (!%p116_p2), 0   ;;  %v494_v3 = vmov (!%p116_p2), 0.0  }
   0x6   : > { %119 = sbr.rel (%p116_p2) target bundleno = 359 (0x167), region = 24  ;;  %465 = vmatprep.subr.bf16.mxu0 (!%p116_p2), %v492_v1  ;;  %469 = vmatprep.subr.bf16.mxu1 (!%p116_p2), %v492_v1  ;;  %vm495_vm3 = vmmov (!%p116_p2), 1   ;;  %vm199_vm5 = vcmask (!%p116_p2), 130048   ;;  %vm273_vm6 = vcmask (!%p116_p2), 64512  }
   0x7   : > { %v156_v2 = vshrl.u32 (!%p116_p2), %v155_v0, 7  ;;  %455 = vmatprep.mubr.msk.f32.mxu0 (!%p116_p2), %vm493_vm0, %v494_v3  ;;  %462 = vmatprep.mubr.msk.f32.mxu1 (!%p116_p2), %vm493_vm0, %v494_v3 }
   0x9   : > { %v157_v4 = vadd.s32 (!%p116_p2), 8, %v156_v2  ;;  %vm164_vm2 = vcmp.lt.s32.totalorder (!%p116_p2), %v156_v2, 7 }
   0xb   : > { %vm159_vm1 = vcmp.lt.s32.totalorder (!%p116_p2), %v157_v4, 15 }
   0xc   : > { %vm467_vm4 = vmpackc.low (!%p116_p2), %vm159_vm1, %vm495_vm3 }
   0xd   : > { %s539_s10 = smov (!%p140_p3, %s430_s10), 1 }
   0xe   : > { %s444_s11 = sshll.u32 %s539_s10, 4  ;;  %s437_s15 = sshll.u32 %s539_s10, 3 }
   0xf   : > { %s144_s14 = scalar_lea.vmem %s535_s0, %s444_s11  ;;  %s148_s18 = scalar_lea.vmem %s536_s1, %s437_s15 }
  0x10   : > { %v153_v5 = vld [vmem:[%s144_s14] sm:$0xff]  ;;  %v154_v6 = vld [vmem:[%s144_s14 + $0x8] sm:$0xff]  ;;  %s152_s21 = scalar_lea.vmem %s537_s2, %s437_s15 }
  0x11   : > { %167 = vxpose.xlu0.b32.start [1/2] (short) (narrow) %v153_v5, 8  ;;  %v162_v7 = vrot.slane %v153_v5, 1  ;;  %v163_v8 = vrot.slane %v154_v6, 1  ;;  %v466_v9 = vpack.c.bf16 %v154_v6, %v153_v5  ;;  %v161_v10 = vsel %vm159_vm1, %v154_v6, 0.0 }
  0x13   : > { %468 = vmatpush3.bf16.msk.msra.mxu0 %vm467_vm4, %v466_v9  ;;  %v165_v11 = vsel %vm164_vm2, %v162_v7, %v163_v8  ;;  %v166_v12 = vsel %vm164_vm2, %v163_v8, %v162_v7 }
  0x14   : > { %v470_v13 = vpack.c.bf16 %v166_v12, %v165_v11 }
  0x15   : > { %168 = vxpose.xlu0.b32.end [2/2] (short) (narrow) %v161_v10, 8 }
  0x16   : > { %471 = vmatpush3.bf16.msra.mxu1 %v470_v13 }
  0x91   : > { %v183_v14 = vpop.trf.xlu0 }
  0x92   : > { %456 = vmatmul.mubr.msk.f32.vlgmr.msra.gmra.mrb[0].mxu0 %vm199_vm5, %v183_v14  ;;  %463 = vmatmul.mubr.msk.f32.vlgmr.msra.gmra.mrb[0].mxu1 %vm199_vm5, %v183_v14 }
 0x165   : > { %v269_v15 = vpop.f32.mrb[0].mxu0  ;;  %v341_v16 = vpop.f32.mrb[0].mxu1 }
 0x166   : > { %274 = vst.msk [vmem:[%s148_s18] sm:$0xff] %vm273_vm6, %v269_v15  ;;  %345 = vst.msk [vmem:[%s152_s21] sm:$0xff] %vm273_vm6, %v341_v16  ;;  %v457_v17 = vpop.f32.mrb[1].mxu0  ;;  %v464_v18 = vpop.f32.mrb[1].mxu1 }
 0x167 PF: > { %s13_s9 = sadd.s32 1, %s490_s9  }
 0x168   : > { %p10_p4 = scmp.ge.s32.totalorder %s13_s9, 4  }
 0x16a   :  { %12 = sbr.rel (!%p10_p4) target bundleno = 1 (0x1), region = 66 }

</bundles_post_ra>
